<compile_context>
chip_gen: v6e
topology: v6e:2x2x1
jax: 0.10.0
libtpu: 0.0.40
codegen_flags: <defaults>
</compile_context>

<pallas_src>
import jax
import jax.numpy as jnp
from jax.experimental import pallas as pl
from jax.experimental.pallas import tpu as pltpu


def _round_up(x, m):
    return (x + m - 1) // m * m


def _nlinear_kernel(x_ref, w_ref, b_ref, s_ref, o_ref):
    # x_ref: [S, TN]   lane-dense time-major slab (columns = flattened B*C)
    # w_ref: [Pp, S]   padded weight (resident across grid)
    # b_ref: [Pp, 1]   padded bias
    # s_ref: [Pp, 1]   padded (1 - rowsum(W))  -- folded normalization
    # o_ref: [Pp, TN]
    x = x_ref[...]                                                    # [S, TN]
    seq_last = x[-1:, :]                                              # [1, TN]
    y = jnp.dot(w_ref[...], x, preferred_element_type=jnp.float32)    # MXU
    y = y + b_ref[...] + s_ref[...] * seq_last                        # VPU epilogue
    o_ref[...] = y.astype(o_ref.dtype)


def nlinear_forward(x, weight, bias, *, tn_target=512):
    """x: [B, S, C]; weight: [P, S]; bias: [P]. Returns [B, P, C]."""
    B, S, C = x.shape
    P = weight.shape[0]
    N = B * C

    # --- wrapper-side layout plumbing (lane-dense [S, B*C] slab) -------------
    x2 = jnp.transpose(x, (1, 0, 2)).reshape(S, N).astype(jnp.float32)

    # Lane tile: tn_target-wide when N is large, otherwise pad N up to a 128
    # multiple and process it in a single grid step.
    if N >= tn_target:
        TN = tn_target
    else:
        TN = _round_up(N, 128)
    Np = _round_up(N, TN)
    if Np != N:
        x2 = jnp.pad(x2, ((0, 0), (0, Np - N)))

    # Pad pred_len to a sublane multiple; padded weight rows are zero so the
    # extra output rows are junk that gets sliced off below.
    Pp = _round_up(P, 8)
    w = weight.astype(jnp.float32)
    scale = 1.0 - jnp.sum(w, axis=1)            # [P]  (1 - rowsum(W))
    b = bias.astype(jnp.float32)
    if Pp != P:
        w = jnp.pad(w, ((0, Pp - P), (0, 0)))
        b = jnp.pad(b, (0, Pp - P))
        scale = jnp.pad(scale, (0, Pp - P))
    b2 = b.reshape(Pp, 1)
    scale2 = scale.reshape(Pp, 1)

    grid = (Np // TN,)

    # VMEM budget: double-buffered input + output tiles plus resident params,
    # with headroom; clamp so it also fits v7x's 64 MiB physical VMEM.
    tile_bytes = (S * TN + Pp * TN) * 4
    param_bytes = (Pp * S + 2 * Pp) * 4
    vmem_limit = int(max(8 << 20, min(48 << 20, 4 * tile_bytes + 2 * param_bytes + (1 << 20))))

    y2 = pl.pallas_call(
        _nlinear_kernel,
        out_shape=jax.ShapeDtypeStruct((Pp, Np), jnp.float32),
        grid=grid,
        in_specs=[
            pl.BlockSpec((S, TN), lambda n: (0, n)),    # X2 lane tile
            pl.BlockSpec((Pp, S), lambda n: (0, 0)),    # weight (resident)
            pl.BlockSpec((Pp, 1), lambda n: (0, 0)),    # bias
            pl.BlockSpec((Pp, 1), lambda n: (0, 0)),    # 1 - rowsum(W)
        ],
        out_specs=pl.BlockSpec((Pp, TN), lambda n: (0, n)),
        compiler_params=pltpu.CompilerParams(
            dimension_semantics=("parallel",),
            vmem_limit_bytes=vmem_limit,
        ),
    )(x2, w, b2, scale2)

    # [Pp, Np] -> [P, N] -> [P, B, C] -> [B, P, C]
    y = y2[:P, :N].reshape(P, B, C).transpose(1, 0, 2)
    return y.astype(x.dtype)


def nlinear_reference(x, weight, bias):
    seq_last = x[:, -1:, :]                                  # [B, 1, C]
    xc = x - seq_last                                        # [B, S, C]
    y = jnp.einsum("ps,bsc->bpc", weight, xc) + bias[None, :, None]
    return y + seq_last


def _run_case(key, B, S, P, C):
    kx, kw, kb = jax.random.split(key, 3)
    x = jax.random.normal(kx, (B, S, C), dtype=jnp.float32)
    # nn.Linear(seq_len, pred_len) init: uniform(-1/sqrt(seq_len), 1/sqrt(seq_len)).
    bound = 1.0 / (S ** 0.5)
    weight = jax.random.uniform(kw, (P, S), minval=-bound, maxval=bound, dtype=jnp.float32)
    bias = jax.random.uniform(kb, (P,), minval=-bound, maxval=bound, dtype=jnp.float32)

    out = jax.block_until_ready(nlinear_forward(x, weight, bias))
    ref = nlinear_reference(x, weight, bias)
    assert out.shape == (B, P, C), (out.shape, (B, P, C))
    assert jnp.allclose(out, ref, atol=1e-4, rtol=1e-4), "mismatch vs reference"


if __name__ == "__main__":
    key = jax.random.PRNGKey(0)
    k1, k2 = jax.random.split(key)

    # Small shape, single lane tile (N = B*C = 32 -> padded to 128).
    _run_case(k1, B=2, S=8, P=12, C=16)

    # Slightly larger shape exercising multi-tile grid + padding
    # (N = 4*160 = 640 -> two 512-wide lane tiles, P=36 -> Pp=40).
    _run_case(k2, B=4, S=24, P=36, C=160)

    print("KERNEL_OK")
</pallas_src>

<mosaic_0001>
module attributes {stable_mosaic.version = 11 : i64} {
  func.func @_nlinear_kernel(%arg0: i32, %arg1: memref<8x128xf32, #tpu.memory_space<vmem>>, %arg2: memref<16x8xf32, #tpu.memory_space<vmem>>, %arg3: memref<16x1xf32, #tpu.memory_space<vmem>>, %arg4: memref<16x1xf32, #tpu.memory_space<vmem>>, %arg5: memref<16x128xf32, #tpu.memory_space<vmem>>) attributes {dimension_semantics = [#tpu.dimension_semantics<parallel>], iteration_bounds = array<i64: 1>, scalar_prefetch = 0 : i64, scratch_operands = 0 : i64, tpu.core_type = #tpu.core_type<tc>, window_params = [{transform_indices = @transform_0, window_bounds = array<i64: 8, 128>}, {pipeline_mode = #tpu.pipeline_mode<synchronous>, transform_indices = @transform_1, window_bounds = array<i64: 16, 8>}, {pipeline_mode = #tpu.pipeline_mode<synchronous>, transform_indices = @transform_2, window_bounds = array<i64: 16, 1>}, {pipeline_mode = #tpu.pipeline_mode<synchronous>, transform_indices = @transform_3, window_bounds = array<i64: 16, 1>}, {transform_indices = @transform_4, window_bounds = array<i64: 16, 128>}]} {
    %c0 = arith.constant 0 : index
    %c0_0 = arith.constant 0 : index
    %0 = vector.load %arg1[%c0, %c0_0] : memref<8x128xf32, #tpu.memory_space<vmem>>, vector<8x128xf32>
    %1 = vector.extract_strided_slice %0 {offsets = [7, 0], sizes = [1, 128], strides = [1, 1]} : vector<8x128xf32> to vector<1x128xf32>
    %c0_1 = arith.constant 0 : index
    %c0_2 = arith.constant 0 : index
    %2 = vector.load %arg2[%c0_1, %c0_2] : memref<16x8xf32, #tpu.memory_space<vmem>>, vector<16x8xf32>
    %cst = arith.constant dense<0.000000e+00> : vector<16x128xf32>
    %3 = tpu.matmul %2, %0, %cst {dimension_numbers = #tpu.dot_dimension_numbers<[1], [0], [0], [1], [0, 0, 1, 1], [], []>} : vector<16x8xf32>, vector<8x128xf32>, vector<16x128xf32> -> vector<16x128xf32>
    %c0_3 = arith.constant 0 : index
    %c0_4 = arith.constant 0 : index
    %4 = vector.load %arg3[%c0_3, %c0_4] : memref<16x1xf32, #tpu.memory_space<vmem>>, vector<16x1xf32>
    %5 = vector.broadcast %4 : vector<16x1xf32> to vector<16x128xf32>
    %6 = arith.addf %3, %5 : vector<16x128xf32>
    %c0_5 = arith.constant 0 : index
    %c0_6 = arith.constant 0 : index
    %7 = vector.load %arg4[%c0_5, %c0_6] : memref<16x1xf32, #tpu.memory_space<vmem>>, vector<16x1xf32>
    %8 = vector.broadcast %7 : vector<16x1xf32> to vector<16x128xf32>
    %9 = vector.broadcast %1 : vector<1x128xf32> to vector<16x128xf32>
    %10 = arith.mulf %8, %9 : vector<16x128xf32>
    %11 = arith.addf %6, %10 : vector<16x128xf32>
    %c0_7 = arith.constant 0 : index
    %c0_8 = arith.constant 0 : index
    %12 = vector.load %arg5[%c0_7, %c0_8] : memref<16x128xf32, #tpu.memory_space<vmem>>, vector<16x128xf32>
    tpu.vector_store %arg5[%c0_7, %c0_8], %11 {strides = array<i32>} : memref<16x128xf32, #tpu.memory_space<vmem>>, vector<16x128xf32>,
    return
  }
  func.func @transform_0(%arg0: i32) -> (i32, i32) {
    %c0_i32 = arith.constant 0 : i32
    %c0_i32_0 = arith.constant 0 : i32
    return %c0_i32, %arg0 : i32, i32
  }
  func.func @transform_1(%arg0: i32) -> (i32, i32) {
    %c0_i32 = arith.constant 0 : i32
    %c0_i32_0 = arith.constant 0 : i32
    %c0_i32_1 = arith.constant 0 : i32
    return %c0_i32, %c0_i32_0 : i32, i32
  }
  func.func @transform_2(%arg0: i32) -> (i32, i32) {
    %c0_i32 = arith.constant 0 : i32
    %c0_i32_0 = arith.constant 0 : i32
    %c0_i32_1 = arith.constant 0 : i32
    return %c0_i32, %c0_i32_0 : i32, i32
  }
  func.func @transform_3(%arg0: i32) -> (i32, i32) {
    %c0_i32 = arith.constant 0 : i32
    %c0_i32_0 = arith.constant 0 : i32
    %c0_i32_1 = arith.constant 0 : i32
    return %c0_i32, %c0_i32_0 : i32, i32
  }
  func.func @transform_4(%arg0: i32) -> (i32, i32) {
    %c0_i32 = arith.constant 0 : i32
    %c0_i32_0 = arith.constant 0 : i32
    return %c0_i32, %arg0 : i32, i32
  }
}

</mosaic_0001>

<bundles_post_ra>
// kernel: tpu_custom_call.1
= control target key start
LH: loop header
LB: loop body
LE: loop exit
PB: predicated region body
PF: predicated region fallthrough
CT: control target
= control target key end

     0   :  { %vm33_vm0 = vcmask 64512   ;;  %v191_v5 = vmov 0   ;;  %s244_s0 = inlined_call_operand.vmem [shape: f32[8,128], index: 0, kind: input, shape index: {}]   ;;  %s245_s1 = inlined_call_operand.vmem [shape: f32[16,8], index: 1, kind: input, shape index: {}]   ;;  %s246_s2 = inlined_call_operand.vmem [shape: f32[16,1], index: 2, kind: input, shape index: {}]   ;;  %s247_s3 = inlined_call_operand.vmem [shape: f32[16,1], index: 3, kind: input, shape index: {}]   ;;  %s248_s4 = inlined_call_operand.hbm [shape: f32[16,128], index: 4, kind: output, shape index: {}]  }
   0x1   :  { %v18_v0 = vld [vmem:[%s244_s0] sm:$0xff]  ;;  %v20_v2 = vld [vmem:[%s245_s1 + $0x8] sm:$0xff]  ;;  %168 = vset.pattern.permute.xlu1 %v191_v5 }
   0x2   :  { %v19_v1 = vld [vmem:[%s245_s1] sm:$0xff]  ;;  %158 = vmatprep.subr.mxu0 %v18_v0 }
   0x3   :  { %160 = vmatprep.mubr.msk.f32.mxu0 %vm33_vm0, %v19_v1  ;;  %v115_v3 = vld [vmem:[%s247_s3] sm:$0xff]  ;;  %159 = vmatpush3.msra.mxu0 %v18_v0 }
   0x4   :  { %v21_v4 = vld [vmem:[%s246_s2] sm:$0xff] }
   0x5   :  { %9 = vsyncpa [#allocation3], 0  ;;  %161 = vmatmul.mubr.msk.f32.vlgmr.msra.gmra.mxu0 %vm33_vm0, %v20_v2  ;;  %167 = vset.pattern.permute.xlu0 %v191_v5  ;;  %v116_v6 = vld [vmem:[%s247_s3 + $0x8] sm:$0xff]  ;;  %v127_v8 = vlaneseq  ;;  %s192_s27 = smov [#allocation2]  }
   0x6   :  { %119 = vperm.xlu1 %168, %v115_v3   ;;  %25 = vperm.xlu0 %167, %v21_v4   ;;  %v22_v7 = vld [vmem:[%s246_s2 + $0x8] sm:$0xff]  ;;  %s142_s28 = sshll.u32 %s192_s27, 4  ;;  %s143_s28 = int_to_ptr.vmem [resolvable:$true] %s142_s28 }
   0x7   :  { %v128_v9 = vshrl.u32 %v127_v8, 7  ;;  %s169_s2 = scalar_lea.vmem %s143_s28, 256  ;;  %p174_p1 = scmp.lt.s32.totalorder %s143_s28, %s143_s28 }
   0x8   :  { %p170_p0 = scmp.ne.s32.totalorder %s143_s28, %s169_s2  ;;  %p175_p2 = scmp.lt.s32.totalorder %s169_s2, %s169_s2 }
   0x9   :  { %v129_v11 = vsub.s32 7, %v128_v9 }
   0xa   :  { %124 = vperm.xlu1 %168, %v116_v6   ;;  %30 = vperm.xlu0 %167, %v22_v7   ;;  %p176_p3 = por %p175_p2, %p174_p1 }
   0xb   :  { %v130_v13 = vrot.slane %v18_v0, %v129_v11 }
   0xc   :  { %p177_p4 = pnand %p176_p3, %p170_p0 }
  0x81   :  { %v120_v10 = vpop.permute.xlu1 %119  ;;  %v26_v12 = vpop.permute.xlu0 %25 }
  0x82   :  { %v131_v20 = vmul.f32 %v130_v13, %v120_v10 }
  0x85   :  { %v125_v14 = vpop.permute.xlu1 %124  ;;  %v31_v15 = vpop.permute.xlu0 %30 }
  0x86   :  { %v132_v17 = vmul.f32 %v130_v13, %v125_v14 }
  0xc5   :  { %v162_v16 = vpop.f32.mrf.mxu0 }
  0xc6   :  { %v112_v18 = vadd.f32 %v162_v16, %v31_v15 }
  0xc7   :  { %v106_v19 = vpop.f32.mrf.mxu0 }
  0xc8   :  { %v134_v21 = vadd.f32 %v132_v17, %v112_v18  ;;  %v107_v22 = vadd.f32 %v106_v19, %v26_v12 }
  0xca   :  { %136 = vst [vmem:[#allocation2 + $0x8] sm:$0xff] %v134_v21  ;;  %v133_v23 = vadd.f32 %v131_v20, %v107_v22 }
  0xcc   :  { %135 = vst [vmem:[#allocation2] sm:$0xff] %v133_v23 }
  0xcd   :  { %180 = shalt.err (!%p177_p4)
}
  0xce   :  { %s193_s3 = smov 128   ;;  %s194_s29 = smov 8  }
  0xcf   :  { %148 = dma.vmem_to_hbm [thread:$0]  %s143_s28, 256, %s248_s4, [#allocation3], %s193_s3, %s193_s3, %s194_s29  }
  0xd0   :  { %189 = dma.done.wait [#allocation3], 256  }
  0xd1   :  { %190 = vsyncadd [#allocation3], 4294967040 }
  0xd2   :  { %152 = vsyncpa [#allocation3], 1 }

</bundles_post_ra>
